<compile_context>
chip_gen: v7x
topology: tpu7x:2x2x1
jax: 0.10.0
libtpu: 0.0.40
codegen_flags: <defaults>
</compile_context>

<pallas_src>
import math
import functools

import jax
import jax.numpy as jnp
from jax import lax
from jax.experimental import pallas as pl
from jax.experimental.pallas import tpu as pltpu


# --------------------------------- Small helpers ---------------------------------

def _pick_tile(dim, prefs):
    for p in prefs:
        if dim % p == 0:
            return p
    return dim  # small / ragged dims: use the full extent


_VMEM_FLOOR = 16 * 1024 * 1024   # >= v5e default scoped limit
_VMEM_CAP = 48 * 1024 * 1024     # stay under v7x physical 64 MiB with headroom


def _vmem_limit(estimate_bytes):
    return int(min(max(estimate_bytes, _VMEM_FLOOR), _VMEM_CAP))


# --------------------------- Tiled linear: y = x @ W + b ---------------------------

def _linear_kernel(x_ref, w_ref, b_ref, o_ref, acc_ref):
    @pl.when(pl.program_id(2) == 0)
    def _init():
        acc_ref[...] = jnp.zeros_like(acc_ref)

    acc_ref[...] += jnp.dot(
        x_ref[...], w_ref[...], preferred_element_type=jnp.float32
    )

    @pl.when(pl.program_id(2) == pl.num_programs(2) - 1)
    def _finalize():
        # Bias added exactly once (on the final K step), then a single store.
        o_ref[...] = (acc_ref[...] + b_ref[...]).astype(o_ref.dtype)


def linear(x2d, w, b):
    """x2d: (M, K); w: (K, N) (already W^T vs. PyTorch); b: (1, N)."""
    M, K = x2d.shape
    N = w.shape[1]
    tm = _pick_tile(M, (512, 256, 128))
    tn = _pick_tile(N, (512, 256, 128))
    tk = _pick_tile(K, (512, 256, 128))
    grid = (M // tm, N // tn, K // tk)

    itm = x2d.dtype.itemsize
    vmem_est = (
        2 * (tm * tk + tk * tn + tn + tm * tn) * itm   # double-buffered in/out blocks
        + tm * tn * 4                                  # f32 accumulator scratch
        + (4 << 20)
    )
    return pl.pallas_call(
        _linear_kernel,
        out_shape=jax.ShapeDtypeStruct((M, N), x2d.dtype),
        grid=grid,
        in_specs=[
            pl.BlockSpec((tm, tk), lambda i, j, k: (i, k)),
            pl.BlockSpec((tk, tn), lambda i, j, k: (k, j)),
            pl.BlockSpec((1, tn), lambda i, j, k: (0, j)),
        ],
        out_specs=pl.BlockSpec((tm, tn), lambda i, j, k: (i, j)),
        scratch_shapes=[pltpu.VMEM((tm, tn), jnp.float32)],
        compiler_params=pltpu.CompilerParams(
            dimension_semantics=("parallel", "parallel", "arbitrary"),
            vmem_limit_bytes=_vmem_limit(vmem_est),
        ),
    )(x2d, w, b)


# --------------- Relative attention core (one batch / head / q-tile) ---------------

def _rel_attn_kernel(q_ref, k_ref, v_ref, pek_ref, pev_ref, o_ref, *,
                     scale, max_rel):
    tq = q_ref.shape[2]
    S = k_ref.shape[2]
    C = pek_ref.shape[0]
    R = max_rel
    qi = pl.program_id(2)

    # Fold the softmax scale into q (both score terms are linear in q).
    q = q_ref[0, 0].astype(jnp.float32) * scale      # (tq, hd)
    k = k_ref[0, 0].astype(jnp.float32)              # (S, hd)
    v = v_ref[0, 0].astype(jnp.float32)              # (S, hd)
    pe_k = pek_ref[...].astype(jnp.float32)          # (C, hd)
    pe_v = pev_ref[...].astype(jnp.float32)          # (C, hd)

    # Relative-distance bucket index for this query tile (built in-register,
    # no (S, S, hd) gather tables ever materialized).
    row = lax.broadcasted_iota(jnp.int32, (tq, S), 0) + qi * tq
    col = lax.broadcasted_iota(jnp.int32, (tq, S), 1)
    ridx = jnp.clip(col - row, -R, R) + R             # values in [0, C)

    # Bucket masks computed once (f32 0/1) and reused for scores and values.
    masks = [(ridx == c).astype(jnp.float32) for c in range(C)]

    dnum = (((1,), (1,)), ((), ()))                   # contract last dims (no .T)
    # Content scores and relative band term on the MXU.
    w = lax.dot_general(q, k, dnum, preferred_element_type=jnp.float32)       # (tq, S)
    band = lax.dot_general(q, pe_k, dnum, preferred_element_type=jnp.float32)  # (tq, C)
    for c in range(C):
        w = w + masks[c] * band[:, c:c + 1]

    # Softmax over the full key axis (kv axis is un-tiled, so this is exact).
    w = w - jnp.max(w, axis=-1, keepdims=True)
    e = jnp.exp(w)
    p = e * pl.reciprocal(jnp.sum(e, axis=-1, keepdims=True), approx=True)

    # Content value term on the MXU.
    o1 = jnp.dot(p, v, preferred_element_type=jnp.float32)                    # (tq, hd)
    # Relative value term: bucket the probabilities, then one (tq,C)@(C,hd) matmul.
    psums = jnp.concatenate(
        [jnp.sum(masks[c] * p, axis=-1, keepdims=True) for c in range(C)], axis=1
    )                                                                         # (tq, C)
    o2 = jnp.dot(psums, pe_v, preferred_element_type=jnp.float32)             # (tq, hd)

    o_ref[0, 0] = (o1 + o2).astype(o_ref.dtype)


def rel_attention_core(q, k, v, pe_k, pe_v, max_rel):
    # q/k/v: (B, nh, S, hd); pe_k/pe_v: (2*max_rel+1, hd)
    B, nh, S, hd = q.shape
    C = pe_k.shape[0]
    tq = _pick_tile(S, (256, 128))
    grid = (B, nh, S // tq)

    # Double-buffered in/out blocks + f32 (tq, S) score-sized temporaries.
    blocks = 2 * (2 * tq * hd + 2 * S * hd + 2 * C * hd) * q.dtype.itemsize
    temps = 14 * tq * S * 4 + 8 * tq * hd * 4
    kernel = functools.partial(
        _rel_attn_kernel, scale=1.0 / math.sqrt(hd), max_rel=max_rel
    )
    return pl.pallas_call(
        kernel,
        out_shape=jax.ShapeDtypeStruct((B, nh, S, hd), q.dtype),
        grid=grid,
        in_specs=[
            pl.BlockSpec((1, 1, tq, hd), lambda b, h, i: (b, h, i, 0)),
            pl.BlockSpec((1, 1, S, hd), lambda b, h, i: (b, h, 0, 0)),
            pl.BlockSpec((1, 1, S, hd), lambda b, h, i: (b, h, 0, 0)),
            pl.BlockSpec((C, hd), lambda b, h, i: (0, 0)),
            pl.BlockSpec((C, hd), lambda b, h, i: (0, 0)),
        ],
        out_specs=pl.BlockSpec((1, 1, tq, hd), lambda b, h, i: (b, h, i, 0)),
        compiler_params=pltpu.CompilerParams(
            dimension_semantics=("parallel", "parallel", "parallel"),
            vmem_limit_bytes=_vmem_limit(blocks + temps + (4 << 20)),
        ),
    )(q, k, v, pe_k, pe_v)


# --------------------------------- Module forward ---------------------------------

def relative_mh_attention(x, params, num_heads, max_rel=2):
    B, S, H = x.shape
    hd = H // num_heads
    x2 = x.reshape(B * S, H)

    # Fused QKV projection (fused weights precomputed once in make_params).
    qkv = linear(x2, params["w_qkv"], params["b_qkv"])                 # (B*S, 3H)

    # Layout plumbing only: present lane-aligned (S, hd) per-head tiles.
    qkv = jnp.transpose(qkv.reshape(B, S, 3, num_heads, hd), (2, 0, 3, 1, 4))
    q, k, v = qkv[0], qkv[1], qkv[2]                                   # (B, nh, S, hd)

    attn = rel_attention_core(q, k, v, params["rel_pe_k"], params["rel_pe_v"],
                              max_rel)                                 # (B, nh, S, hd)
    attn = jnp.transpose(attn, (0, 2, 1, 3)).reshape(B * S, H)

    # Output projection.
    out = linear(attn, params["wo"], params["bo"])
    return out.reshape(B, S, H)


# ------------------------------ Reference (pure JAX) ------------------------------

def reference(x, params, num_heads, max_rel=2):
    B, S, H = x.shape
    hd = H // num_heads
    q = x @ params["wq"] + params["bq"]
    k = x @ params["wk"] + params["bk"]
    v = x @ params["wv"] + params["bv"]
    qh = q.reshape(B, S, num_heads, hd).transpose(0, 2, 1, 3)
    kh = k.reshape(B, S, num_heads, hd).transpose(0, 2, 1, 3)
    vh = v.reshape(B, S, num_heads, hd).transpose(0, 2, 1, 3)
    idx = (
        jnp.clip(jnp.arange(S)[None, :] - jnp.arange(S)[:, None], -max_rel, max_rel)
        + max_rel
    )
    rel_k = params["rel_pe_k"][idx]
    rel_v = params["rel_pe_v"][idx]
    w1 = jnp.einsum("bhid,bhjd->bhij", qh, kh)
    w2 = jnp.einsum("bhid,ijd->bhij", qh, rel_k)
    w = (w1 + w2) / math.sqrt(hd)
    p = jax.nn.softmax(w, axis=-1)
    o1 = jnp.einsum("bhij,bhjd->bhid", p, vh)
    o2 = jnp.einsum("bhij,ijd->bhid", p, rel_v)
    out = (o1 + o2).transpose(0, 2, 1, 3).reshape(B, S, H)
    return out @ params["wo"] + params["bo"]


# -------------------------------------- Main --------------------------------------

def make_params(key, hid_dim, num_heads, max_rel=2, dtype=jnp.float32):
    hd = hid_dim // num_heads
    keys = jax.random.split(key, 10)

    def linear_params(kw, kb):
        bound = 1.0 / math.sqrt(hid_dim)
        w = jax.random.uniform(kw, (hid_dim, hid_dim), dtype, -bound, bound)  # stored as W^T
        b = jax.random.uniform(kb, (1, hid_dim), dtype, -bound, bound)
        return w, b

    wq, bq = linear_params(keys[0], keys[1])
    wk, bk = linear_params(keys[2], keys[3])
    wv, bv = linear_params(keys[4], keys[5])
    wo, bo = linear_params(keys[6], keys[7])

    fan_in, fan_out = hd, 2 * max_rel + 1
    xb = math.sqrt(6.0 / (fan_in + fan_out))
    rel_pe_k = jax.random.uniform(keys[8], (2 * max_rel + 1, hd), dtype, -xb, xb)
    rel_pe_v = jax.random.uniform(keys[9], (2 * max_rel + 1, hd), dtype, -xb, xb)

    # Fused QKV projection weights, built once (not per forward call).
    w_qkv = jnp.concatenate([wq, wk, wv], axis=1)
    b_qkv = jnp.concatenate([bq, bk, bv], axis=1)

    return dict(
        wq=wq, bq=bq, wk=wk, bk=bk, wv=wv, bv=bv, wo=wo, bo=bo,
        w_qkv=w_qkv, b_qkv=b_qkv,
        rel_pe_k=rel_pe_k, rel_pe_v=rel_pe_v,
    )


if __name__ == "__main__":
    B, S, hid_dim, num_heads = 2, 8, 32, 4
    max_rel = 2

    key = jax.random.PRNGKey(0)
    kx, kp = jax.random.split(key)
    x = jax.random.normal(kx, (B, S, hid_dim), jnp.float32)
    params = make_params(kp, hid_dim, num_heads, max_rel)

    out = relative_mh_attention(x, params, num_heads, max_rel)
    out = jax.block_until_ready(out)

    ref = reference(x, params, num_heads, max_rel)
    assert out.shape == (B, S, hid_dim)
    # Tolerance covers the approximate (EUP) reciprocal in the softmax denominator.
    assert jnp.allclose(out, ref, atol=1e-3, rtol=1e-3), "mismatch vs pure-JAX reference"

    print("KERNEL_OK")
</pallas_src>

<mosaic_0001>
module attributes {stable_mosaic.version = 11 : i64} {
  func.func @_linear_kernel(%arg0: i32, %arg1: i32, %arg2: i32, %arg3: memref<16x32xf32, #tpu.memory_space<vmem>>, %arg4: memref<32x96xf32, #tpu.memory_space<vmem>>, %arg5: memref<1x96xf32, #tpu.memory_space<vmem>>, %arg6: memref<16x96xf32, #tpu.memory_space<vmem>>, %arg7: memref<16x96xf32, #tpu.memory_space<vmem>>) attributes {dimension_semantics = [#tpu.dimension_semantics<parallel>, #tpu.dimension_semantics<parallel>, #tpu.dimension_semantics<arbitrary>], iteration_bounds = array<i64: 1, 1, 1>, scalar_prefetch = 0 : i64, scratch_operands = 1 : i64, tpu.core_type = #tpu.core_type<tc>, window_params = [{transform_indices = @transform_0, window_bounds = array<i64: 16, 32>}, {transform_indices = @transform_1, window_bounds = array<i64: 32, 96>}, {transform_indices = @transform_2, window_bounds = array<i64: 1, 96>}, {transform_indices = @transform_3, window_bounds = array<i64: 16, 96>}]} {
    %c0_i32 = arith.constant 0 : i32
    %0 = arith.cmpi eq, %arg2, %c0_i32 : i32
    %1 = arith.extui %0 : i1 to i32
    %c0_i32_0 = arith.constant 0 : i32
    %2 = arith.cmpi ne, %1, %c0_i32_0 : i32
    scf.if %2 {
      %cst_10 = arith.constant 0.000000e+00 : f32
      %12 = vector.broadcast %cst_10 : f32 to vector<16x96xf32>
      %c0_11 = arith.constant 0 : index
      %c0_12 = arith.constant 0 : index
      %13 = vector.load %arg7[%c0_11, %c0_12] : memref<16x96xf32, #tpu.memory_space<vmem>>, vector<16x96xf32>
      tpu.vector_store %arg7[%c0_11, %c0_12], %12 {strides = array<i32>} : memref<16x96xf32, #tpu.memory_space<vmem>>, vector<16x96xf32>,
    } else {
    }
    %c0 = arith.constant 0 : index
    %c0_1 = arith.constant 0 : index
    %3 = vector.load %arg7[%c0, %c0_1] : memref<16x96xf32, #tpu.memory_space<vmem>>, vector<16x96xf32>
    %c0_2 = arith.constant 0 : index
    %c0_3 = arith.constant 0 : index
    %4 = vector.load %arg3[%c0_2, %c0_3] : memref<16x32xf32, #tpu.memory_space<vmem>>, vector<16x32xf32>
    %c0_4 = arith.constant 0 : index
    %c0_5 = arith.constant 0 : index
    %5 = vector.load %arg4[%c0_4, %c0_5] : memref<32x96xf32, #tpu.memory_space<vmem>>, vector<32x96xf32>
    %cst = arith.constant dense<0.000000e+00> : vector<16x96xf32>
    %6 = tpu.matmul %4, %5, %cst {dimension_numbers = #tpu.dot_dimension_numbers<[1], [0], [0], [1], [0, 0, 1, 1], [], []>} : vector<16x32xf32>, vector<32x96xf32>, vector<16x96xf32> -> vector<16x96xf32>
    %7 = arith.addf %3, %6 : vector<16x96xf32>
    %c0_6 = arith.constant 0 : index
    %c0_7 = arith.constant 0 : index
    %8 = vector.load %arg7[%c0_6, %c0_7] : memref<16x96xf32, #tpu.memory_space<vmem>>, vector<16x96xf32>
    tpu.vector_store %arg7[%c0_6, %c0_7], %7 {strides = array<i32>} : memref<16x96xf32, #tpu.memory_space<vmem>>, vector<16x96xf32>,
    %c0_i32_8 = arith.constant 0 : i32
    %9 = arith.cmpi eq, %arg2, %c0_i32_8 : i32
    %10 = arith.extui %9 : i1 to i32
    %c0_i32_9 = arith.constant 0 : i32
    %11 = arith.cmpi ne, %10, %c0_i32_9 : i32
    scf.if %11 {
      %c0_10 = arith.constant 0 : index
      %c0_11 = arith.constant 0 : index
      %12 = vector.load %arg7[%c0_10, %c0_11] : memref<16x96xf32, #tpu.memory_space<vmem>>, vector<16x96xf32>
      %c0_12 = arith.constant 0 : index
      %c0_13 = arith.constant 0 : index
      %13 = vector.load %arg5[%c0_12, %c0_13] : memref<1x96xf32, #tpu.memory_space<vmem>>, vector<1x96xf32>
      %14 = vector.broadcast %13 : vector<1x96xf32> to vector<16x96xf32>
      %15 = arith.addf %12, %14 : vector<16x96xf32>
      %c0_14 = arith.constant 0 : index
      %c0_15 = arith.constant 0 : index
      %16 = vector.load %arg6[%c0_14, %c0_15] : memref<16x96xf32, #tpu.memory_space<vmem>>, vector<16x96xf32>
      tpu.vector_store %arg6[%c0_14, %c0_15], %15 {strides = array<i32>} : memref<16x96xf32, #tpu.memory_space<vmem>>, vector<16x96xf32>,
    } else {
    }
    return
  }
  func.func @transform_0(%arg0: i32, %arg1: i32, %arg2: i32) -> (i32, i32) {
    %c0_i32 = arith.constant 0 : i32
    return %arg0, %arg2 : i32, i32
  }
  func.func @transform_1(%arg0: i32, %arg1: i32, %arg2: i32) -> (i32, i32) {
    %c0_i32 = arith.constant 0 : i32
    return %arg2, %arg1 : i32, i32
  }
  func.func @transform_2(%arg0: i32, %arg1: i32, %arg2: i32) -> (i32, i32) {
    %c0_i32 = arith.constant 0 : i32
    %c0_i32_0 = arith.constant 0 : i32
    return %c0_i32, %arg1 : i32, i32
  }
  func.func @transform_3(%arg0: i32, %arg1: i32, %arg2: i32) -> (i32, i32) {
    %c0_i32 = arith.constant 0 : i32
    return %arg0, %arg1 : i32, i32
  }
}

</mosaic_0001>

<bundles_post_ra>
// kernel: tpu_custom_call.1
= control target key start
LH: loop header
LB: loop body
LE: loop exit
PB: predicated region body
PF: predicated region fallthrough
CT: control target
= control target key end

     0   :  { %8 = vsyncpa [#allocation4], 0  ;;  %s365_s0 = inlined_call_operand.hbm [shape: f32[16,32], index: 0, kind: input, shape index: {}]   ;;  %s366_s1 = inlined_call_operand.hbm [shape: f32[32,96], index: 1, kind: input, shape index: {}]   ;;  %s367_s2 = inlined_call_operand.vmem [shape: f32[1,96], index: 2, kind: input, shape index: {}]   ;;  %s368_s3 = inlined_call_operand.hbm [shape: f32[16,96], index: 3, kind: output, shape index: {}]  }
   0x1   :  { %9 = vsyncpa [#allocation7], 0 }
   0x2   :  { %10 = vsyncpa [#allocation5], 0  ;;  %s285_s12 = smov [#allocation3]   ;;  %s213_s16 = scalar_lea.hbm %s365_s0, 256 }
   0x3   :  { %s16_s13 = sshll.u32 %s285_s12, 4  ;;  %p214_p0 = scmp.ne.s32.totalorder %s365_s0, %s213_s16  ;;  %s17_s13 = int_to_ptr.vmem [resolvable:$true] %s16_s13 }
   0x4   :  { %p217_p1 = scmp.lt.u32.totalorder %s213_s16, %s365_s0 }
   0x6   :  { %p219_p2 = pnand %p217_p1, %p214_p0 }
   0x8   :  { %222 = shalt.err (!%p219_p2)
}
   0x9   :  { %s223_s21 = scalar_lea.vmem %s17_s13, 256  ;;  %p228_p4 = scmp.lt.s32.totalorder %s17_s13, %s17_s13 }
   0xa   :  { %p224_p3 = scmp.ne.s32.totalorder %s17_s13, %s223_s21  ;;  %p229_p5 = scmp.lt.s32.totalorder %s223_s21, %s223_s21 }
   0xc   :  { %p230_p6 = por %p229_p5, %p228_p4 }
   0xe   :  { %p231_p7 = pnand %p230_p6, %p224_p3 }
  0x10   :  { %234 = shalt.err (!%p231_p7)
}
  0x11   :  { %s286_s22 = smov 128   ;;  %s287_s23 = smov 8  }
  0x12   :  { %22 = dma.hbm_to_vmem [thread:$0]  %s365_s0, 256, %s17_s13, [#allocation4], %s286_s22, %s286_s22, %s287_s23  }
  0x13   :  { %s288_s26 = smov [#allocation6]   ;;  %s235_s30 = scalar_lea.hbm %s366_s1, 512 }
  0x14   :  { %s28_s27 = sshll.u32 %s288_s26, 4  ;;  %p236_p8 = scmp.ne.s32.totalorder %s366_s1, %s235_s30  ;;  %s29_s27 = int_to_ptr.vmem [resolvable:$true] %s28_s27 }
  0x15   :  { %p239_p9 = scmp.lt.u32.totalorder %s235_s30, %s366_s1 }
  0x17   :  { %p241_p10 = pnand %p239_p9, %p236_p8 }
  0x19   :  { %244 = shalt.err (!%p241_p10)
}
  0x1a   :  { %s245_s8 = scalar_lea.vmem %s29_s27, 512  ;;  %p250_p12 = scmp.lt.s32.totalorder %s29_s27, %s29_s27 }
  0x1b   :  { %p246_p11 = scmp.ne.s32.totalorder %s29_s27, %s245_s8  ;;  %p251_p13 = scmp.lt.s32.totalorder %s245_s8, %s245_s8 }
  0x1d   :  { %p252_p0 = por %p251_p13, %p250_p12 }
  0x1f   :  { %p253_p1 = pnand %p252_p0, %p246_p11 }
  0x21   :  { %256 = shalt.err (!%p253_p1)
}
  0x22   :  { %34 = dma.hbm_to_vmem [thread:$0]  %s366_s1, 512, %s29_s27, [#allocation7], %s286_s22, %s286_s22, %s287_s23  }
  0x23   :  { %279 = dma.done.wait [#allocation4], 256  }
  0x24   :  { %280 = vsyncadd [#allocation4], 4294967040 }
  0x25   :  { %281 = dma.done.wait [#allocation7], 512  }
  0x26   :  { %282 = vsyncadd [#allocation7], 4294966784  ;;  %vm47_vm0 = vcmask 785408   ;;  %v289_v0 = vmov 0.0   ;;  %vm58_vm1 = vcmask 261120   ;;  %v54_v1 = vld [vmem:[#allocation6] sm:$0xff] }
  0x27   :  { %49 = vst.msk [vmem:[#allocation2 + $0x8] sm:$0xff] %vm47_vm0, %v289_v0  ;;  %48 = vst.msk [vmem:[#allocation2] sm:$0xff] %vm47_vm0, %v289_v0  ;;  %v55_v2 = vld [vmem:[#allocation6 + $0x8] sm:$0xff]  ;;  %v56_v3 = vld [vmem:[#allocation6 + $0x10] sm:$0xff]  ;;  %s290_s11 = smov [#allocation8]  }
  0x28   :  { %v199_v4 = vpack.c.bf16 %v55_v2, %v54_v1  ;;  %v57_v5 = vld [vmem:[#allocation6 + $0x18] sm:$0xff]  ;;  %v52_v6 = vld [vmem:[#allocation3] sm:$0xff]  ;;  %v181_v15 = vld [vmem:[%s367_s2] ss:$0 sm:$0xff]  ;;  %s166_s12 = sshll.u32 %s290_s11, 4  ;;  %s167_s12 = int_to_ptr.vmem [resolvable:$true] %s166_s12 }
  0x29   :  { %v203_v7 = vpack.c.bf16 %v57_v5, %v56_v3  ;;  %196 = vmatprep.mubr.msk.f32.mxu0 %vm58_vm1, %v52_v6  ;;  %v53_v8 = vld [vmem:[#allocation3 + $0x8] sm:$0xff]  ;;  %s257_s13 = scalar_lea.vmem %s167_s12, 256  ;;  %p262_p3 = scmp.lt.s32.totalorder %s167_s12, %s167_s12 }
  0x2a   :  { %200 = vmatprep.subr.bf16.mxu0 %v199_v4  ;;  %p258_p2 = scmp.ne.s32.totalorder %s167_s12, %s257_s13  ;;  %p263_p4 = scmp.lt.s32.totalorder %s257_s13, %s257_s13 }
  0x2b   :  { %202 = vmatpush3.bf16.msra.mxu0 %v199_v4 }
  0x2c   :  { %204 = vmatprep.subr.bf16.mxu0 %v203_v7  ;;  %p264_p5 = por %p263_p4, %p262_p3 }
  0x2e   :  { %v51_v9 = vld [vmem:[#allocation2 + $0x8] sm:$0xff]  ;;  %v50_v10 = vld [vmem:[#allocation2] sm:$0xff]  ;;  %p265_p6 = pnand %p264_p5, %p258_p2 }
  0x2f   :  { %206 = vmatpush3.bf16.msra.mxu0 %v203_v7 }
  0x32   :  { %197 = vmatmul.mubr.msk.f32.vlgmr.msra.gmra.mrb[0].mxu0 %vm58_vm1, %v53_v8 }
 0x105   :  { %v198_v11 = vpop.f32.mrb[0].mxu0 }
 0x106   :  { %v141_v12 = vadd.f32 %v198_v11, %v51_v9  ;;  %v131_v13 = vpop.f32.mrb[1].mxu0 }
 0x107   :  { %v140_v14 = vadd.f32 %v131_v13, %v50_v10 }
 0x108   :  { %144 = vst.msk [vmem:[#allocation2 + $0x8] sm:$0xff] %vm47_vm0, %v141_v12 }
 0x109   :  { %143 = vst.msk [vmem:[#allocation2] sm:$0xff] %vm47_vm0, %v140_v14 }
 0x10f   :  { %v149_v16 = vld [vmem:[#allocation2 + $0x8] sm:$0xff] }
 0x110   :  { %v148_v17 = vld [vmem:[#allocation2] sm:$0xff]  ;;  %v158_v18 = vadd.f32 %v181_v15, %v149_v16 }
 0x111   :  { %v157_v19 = vadd.f32 %v181_v15, %v148_v17 }
 0x112   :  { %160 = vst.msk [vmem:[#allocation8 + $0x8] sm:$0xff] %vm47_vm0, %v158_v18 }
 0x113   :  { %159 = vst.msk [vmem:[#allocation8] sm:$0xff] %vm47_vm0, %v157_v19 }
 0x114   :  { %268 = shalt.err (!%p265_p6)
}
 0x115   :  { %s269_s15 = scalar_lea.hbm %s368_s3, 256 }
 0x116   :  { %p270_p7 = scmp.ne.s32.totalorder %s368_s3, %s269_s15  ;;  %p273_p8 = scmp.lt.u32.totalorder %s269_s15, %s368_s3 }
 0x118   :  { %p275_p9 = pnand %p273_p8, %p270_p7 }
 0x11a   :  { %278 = shalt.err (!%p275_p9)
}
 0x11b   :  { %172 = dma.vmem_to_hbm [thread:$0]  %s167_s12, 256, %s368_s3, [#allocation5], %s286_s22, %s286_s22, %s287_s23  }
 0x11c   :  { %283 = dma.done.wait [#allocation5], 256  }
 0x11d   :  { %284 = vsyncadd [#allocation5], 4294967040 }
 0x11e   :  { %176 = vsyncpa [#allocation4], 1 }
 0x11f   :  { %177 = vsyncpa [#allocation7], 1 }
 0x120   :  { %178 = vsyncpa [#allocation5], 1 }

</bundles_post_ra>
